<compile_context>
chip_gen: v6e
topology: v6e:2x2x1
jax: 0.10.0
libtpu: 0.0.40
codegen_flags: <defaults>
</compile_context>

<pallas_src>
import functools

import jax
import jax.numpy as jnp
from jax import lax
from jax.experimental import pallas as pl
from jax.experimental.pallas import tpu as pltpu


# --------------------------- chip-derived sizing ------------------------------
def _vmem_limit_bytes():
    try:
        cap = int(pltpu.get_tpu_info().vmem_capacity_bytes)
    except Exception:
        cap = 64 * 1024 * 1024          # conservative (v7x per-TC VMEM)
    # Request ~75% of physical VMEM (96 MiB on v5e/v6e, 48 MiB on v7x); the default
    # scoped limit (16-32 MiB) is far too small for large lane-dense tiles.
    return max(32 * 1024 * 1024, (cap * 3) // 4)


_VMEM_LIMIT = _vmem_limit_bytes()


def _ceil_to(v, m):
    return -(-v // m) * m


def _pick_tiles(n_images, canvas_len, max_shift, cin, cout):
    """Spatial (lane) tile T and halo block Th, both multiples of 128."""
    # Approximate VMEM bytes per canvas column in one grid step: double-buffered bf16
    # streams (x tile, mask, y tile) + in-kernel temporaries (concat window, shifted
    # slice, f32 accumulator).
    per_col = (4 * (2 * cin + 1 + 2 * cout)   # 2 pipeline buffers x bf16 streams
               + 4 * cin                      # concat window + shifted slice (bf16)
               + 8 * cout                     # f32 accumulator (+ headroom)
               + 16)
    budget = (_VMEM_LIMIT * 3) // 5           # headroom for weights / compiler temps
    t_cap = max(128, (budget // per_col) // 128 * 128)
    t_need = max(128, _ceil_to(max(max_shift, 1), 128))   # halo must fit in one block
    t_full = _ceil_to(canvas_len, 128)
    t = max(min(t_cap, t_full), t_need)
    # Keep >= 2 grid points when possible so a v7x megacore can shard the grid.
    if n_images == 1 and t >= t_full and t_full > t_need:
        t = max(t_need, _ceil_to(max(t_full // 2, 128), 128))
    # Halo block: smallest multiple of 128 >= max_shift that divides T.
    th = _ceil_to(max(max_shift, 1), 128)
    while th < t and t % th:
        th += 128
    th = min(th, t)
    return t, th


# ----------------------------- Pallas kernels ---------------------------------
def _fused_conv_stats_kernel(x0_ref, x1_ref, w_ref, mask_ref, y_ref, stats_ref,
                             *, shifts, tile):
    # x0_ref:   (Cin, T)       bf16  spatial tile of the flattened zero-padded input
    # x1_ref:   (Cin, Th)      bf16  halo block immediately following the tile
    # w_ref:    (KH*KW, Cout, Cin) bf16, grid-constant (resident in VMEM)
    # mask_ref: (1, T)         bf16  1 for valid output columns, 0 for canvas garbage
    # y_ref:    (Cout, T)      bf16  conv output tile (lane-dense store)
    # stats_ref:(Cout, 2)      f32   per-tile [sum, sum-of-squares] of masked output
    xw = jnp.concatenate([x0_ref[...], x1_ref[...]], axis=-1)      # (Cin, T + Th)

    def tap(k):
        d0 = shifts[k]                                             # static python int
        return jnp.dot(w_ref[k], xw[:, d0:d0 + tile],
                       preferred_element_type=jnp.float32)

    acc = tap(0)
    for k in range(1, len(shifts)):
        acc = acc + tap(k)

    m = mask_ref[...].astype(jnp.float32)                          # (1, T)
    acc = acc * m                                                  # zero garbage columns
    y_ref[...] = acc.astype(y_ref.dtype)
    psum = jnp.sum(acc, axis=1, keepdims=True)                     # (Cout, 1)
    psumsq = jnp.sum(acc * acc, axis=1, keepdims=True)             # (Cout, 1)
    stats_ref[...] = jnp.concatenate([psum, psumsq], axis=1)       # (Cout, 2)


def _bn_relu_kernel(y_ref, scale_ref, shift_ref, o_ref):
    # Folded BN affine + ReLU: out = max(y * scale + shift, 0); o aliases y in HBM.
    y = y_ref[...].astype(jnp.float32)
    o_ref[...] = jnp.maximum(y * scale_ref[...] + shift_ref[...], 0.0).astype(o_ref.dtype)


# ------------------------------ JAX wrapper ------------------------------------
@functools.partial(jax.jit, static_argnames=("stride", "padding", "dilation"))
def basic_conv_forward(x_nchw, conv_weight, bn_gamma, bn_beta,
                       stride=1, padding=0, dilation=1):
    """BasicConv forward: Conv2d(no bias) -> BatchNorm2d(train stats) -> ReLU.

    x_nchw: (N, Cin, H, W); conv_weight: (Cout, Cin, KH, KW); bn_gamma/beta: (Cout,)
    returns (N, Cout, OH, OW) float32.
    """
    if stride != 1:
        # TODO(synk): stride > 1 needs strided lane access or an im2col fallback.
        raise NotImplementedError("fused BasicConv kernel supports stride == 1 only")

    n, cin, h, w = x_nchw.shape
    cout, _, kh, kw = conv_weight.shape
    hp, wp = h + 2 * padding, w + 2 * padding
    oh = hp - dilation * (kh - 1)
    ow = wp - dilation * (kw - 1)

    canvas_len = oh * wp                                   # per-image flat canvas (width Wp)
    max_shift = dilation * ((kh - 1) * wp + (kw - 1))
    t, th = _pick_tiles(n, canvas_len, max_shift, cin, cout)
    n_sp = pl.cdiv(canvas_len, t)
    lc_pad = n_sp * t
    lx = lc_pad + th                                       # flat input length incl. halo pad
    blk_ratio = t // th

    # Zero-padded input, flattened per image; bf16 *before* padding (halves XLA traffic).
    xp = jnp.pad(x_nchw.astype(jnp.bfloat16),
                 ((0, 0), (0, 0), (padding, padding), (padding, padding)))
    xf = xp.reshape(n, cin, hp * wp)
    xf = jnp.pad(xf, ((0, 0), (0, 0), (0, lx - hp * wp)))

    # Canvas validity mask: flat position r is a real output iff it lies within the first
    # OH rows and its column (r mod Wp) is < OW.
    r = jnp.arange(lc_pad, dtype=jnp.int32)
    mask = ((r < oh * wp) & (r % wp < ow)).astype(jnp.bfloat16).reshape(1, lc_pad)

    # Per-tap (Cout, Cin) weight matrices, tap-major ordering matching `shifts`.
    w_taps = jnp.transpose(conv_weight.astype(jnp.bfloat16), (2, 3, 0, 1))
    w_taps = w_taps.reshape(kh * kw, cout, cin)
    shifts = tuple(dilation * (i * wp + j) for i in range(kh) for j in range(kw))

    kernel1 = functools.partial(_fused_conv_stats_kernel, shifts=shifts, tile=t)
    cost1 = pl.CostEstimate(
        flops=2 * n * lc_pad * kh * kw * cin * cout,
        transcendentals=0,
        bytes_accessed=(n * cin * (lc_pad + n_sp * th) * 2 + n * lc_pad * 2
                        + kh * kw * cout * cin * 2
                        + n * cout * lc_pad * 2 + n * n_sp * cout * 8))

    y, stats = pl.pallas_call(
        kernel1,
        grid=(n, n_sp),
        in_specs=[
            pl.BlockSpec((None, cin, t), lambda b, s: (b, 0, s)),
            pl.BlockSpec((None, cin, th), lambda b, s: (b, 0, (s + 1) * blk_ratio)),
            pl.BlockSpec((kh * kw, cout, cin), lambda b, s: (0, 0, 0)),   # resident weights
            pl.BlockSpec((1, t), lambda b, s: (0, s)),
        ],
        out_specs=[
            pl.BlockSpec((None, cout, t), lambda b, s: (b, 0, s)),
            pl.BlockSpec((None, None, cout, 2), lambda b, s: (b, s, 0, 0)),
        ],
        out_shape=(
            jax.ShapeDtypeStruct((n, cout, lc_pad), jnp.bfloat16),
            jax.ShapeDtypeStruct((n, n_sp, cout, 2), jnp.float32),
        ),
        compiler_params=pltpu.CompilerParams(
            dimension_semantics=("parallel", "parallel"),
            vmem_limit_bytes=_VMEM_LIMIT),
        cost_estimate=cost1,
    )(xf, xf, w_taps, mask)

    # BatchNorm training-mode stats over all N*OH*OW (biased variance, eps=1e-5), folded
    # into per-channel scale/shift -- negligible (Cout,) math in the wrapper.
    count = n * oh * ow
    total = jnp.sum(stats, axis=(0, 1))                    # (Cout, 2)
    mean = total[:, 0] / count
    var = jnp.maximum(total[:, 1] / count - mean * mean, 0.0)
    inv_std = lax.rsqrt(var + 1e-5)
    scale = (bn_gamma.astype(jnp.float32) * inv_std).reshape(cout, 1)
    shift = bn_beta.astype(jnp.float32).reshape(cout, 1) - mean.reshape(cout, 1) * scale

    cost2 = pl.CostEstimate(
        flops=3 * n * cout * lc_pad,
        transcendentals=0,
        bytes_accessed=2 * n * cout * lc_pad * 2)

    out_canvas = pl.pallas_call(
        _bn_relu_kernel,
        grid=(n, n_sp),
        in_specs=[
            pl.BlockSpec((None, cout, t), lambda b, s: (b, 0, s)),
            pl.BlockSpec((cout, 1), lambda b, s: (0, 0)),
            pl.BlockSpec((cout, 1), lambda b, s: (0, 0)),
        ],
        out_specs=pl.BlockSpec((None, cout, t), lambda b, s: (b, 0, s)),
        out_shape=jax.ShapeDtypeStruct((n, cout, lc_pad), jnp.bfloat16),
        input_output_aliases={0: 0},                       # overwrite y in place
        compiler_params=pltpu.CompilerParams(
            dimension_semantics=("parallel", "parallel"),
            vmem_limit_bytes=_VMEM_LIMIT),
        cost_estimate=cost2,
    )(y, scale, shift)

    # Extract the valid OW columns from the Wp-wide canvas (single fused XLA slice+cast).
    out = out_canvas[:, :, :oh * wp].reshape(n, cout, oh, wp)[:, :, :, :ow]
    return out.astype(jnp.float32)


# ------------------------------ reference --------------------------------------
def _reference(x_nchw, conv_weight, bn_gamma, bn_beta, stride, padding, dilation):
    y = lax.conv_general_dilated(
        x_nchw.astype(jnp.float32), conv_weight.astype(jnp.float32),
        window_strides=(stride, stride),
        padding=((padding, padding), (padding, padding)),
        rhs_dilation=(dilation, dilation),
        dimension_numbers=("NCHW", "OIHW", "NCHW"))
    mean = jnp.mean(y, axis=(0, 2, 3), keepdims=True)
    var = jnp.mean((y - mean) ** 2, axis=(0, 2, 3), keepdims=True)  # biased (train mode)
    y = (y - mean) * lax.rsqrt(var + 1e-5)
    y = y * bn_gamma.reshape(1, -1, 1, 1) + bn_beta.reshape(1, -1, 1, 1)
    return jnp.maximum(y, 0.0)


# --------------------------------- main -----------------------------------------
if __name__ == "__main__":
    key = jax.random.PRNGKey(0)
    k_x, k_w, k_g, k_b = jax.random.split(key, 4)

    # BasicConv(in_planes=4, out_planes=8, kernel_size=3, stride=1, padding=1)
    N, C_IN, H, W = 2, 4, 16, 16
    C_OUT, KH, KW = 8, 3, 3
    STRIDE, PADDING, DILATION = 1, 1, 1

    x = jax.random.normal(k_x, (N, C_IN, H, W), dtype=jnp.float32)
    conv_w = 0.1 * jax.random.normal(k_w, (C_OUT, C_IN, KH, KW), dtype=jnp.float32)
    bn_gamma = 1.0 + 0.1 * jax.random.normal(k_g, (C_OUT,), dtype=jnp.float32)
    bn_beta = 0.1 * jax.random.normal(k_b, (C_OUT,), dtype=jnp.float32)

    out = basic_conv_forward(x, conv_w, bn_gamma, bn_beta,
                             stride=STRIDE, padding=PADDING, dilation=DILATION)
    out = jax.block_until_ready(out)

    ref = _reference(x, conv_w, bn_gamma, bn_beta, STRIDE, PADDING, DILATION)
    ref = jax.block_until_ready(ref)

    assert out.shape == (N, C_OUT, H, W), out.shape
    # Tolerances loosened vs the f32 reference because the MXU operands and the
    # intermediate/normalized activations are bf16 (BN statistics stay in f32).
    max_err = float(jnp.max(jnp.abs(out - ref)))
    mean_err = float(jnp.mean(jnp.abs(out - ref)))
    assert max_err < 5e-2, f"max abs error too large: {max_err}"
    assert mean_err < 1e-2, f"mean abs error too large: {mean_err}"

    print("KERNEL_OK")
</pallas_src>

<mosaic_0001>
module attributes {stable_mosaic.version = 11 : i64} {
  func.func @_fused_conv_stats_kernel(%arg0: i32, %arg1: i32, %arg2: memref<1x4x384xbf16, #tpu.memory_space<vmem>>, %arg3: memref<1x4x128xbf16, #tpu.memory_space<vmem>>, %arg4: memref<9x8x4xbf16, #tpu.memory_space<vmem>>, %arg5: memref<1x384xbf16, #tpu.memory_space<vmem>>, %arg6: memref<1x8x384xbf16, #tpu.memory_space<vmem>>, %arg7: memref<1x1x8x2xf32, #tpu.memory_space<vmem>>) attributes {dimension_semantics = [#tpu.dimension_semantics<parallel>, #tpu.dimension_semantics<parallel>], iteration_bounds = array<i64: 2, 1>, scalar_prefetch = 0 : i64, scratch_operands = 0 : i64, tpu.core_type = #tpu.core_type<tc>, window_params = [{transform_indices = @transform_0, window_bounds = array<i64: 1, 4, 384>}, {transform_indices = @transform_1, window_bounds = array<i64: 1, 4, 128>}, {pipeline_mode = #tpu.pipeline_mode<synchronous>, transform_indices = @transform_2, window_bounds = array<i64: 9, 8, 4>}, {transform_indices = @transform_3, window_bounds = array<i64: 1, 384>}, {transform_indices = @transform_4, window_bounds = array<i64: 1, 8, 384>}, {transform_indices = @transform_5, window_bounds = array<i64: 1, 1, 8, 2>}]} {
    %c0 = arith.constant 0 : index
    %c0_0 = arith.constant 0 : index
    %c0_1 = arith.constant 0 : index
    %0 = vector.load %arg2[%c0, %c0_0, %c0_1] : memref<1x4x384xbf16, #tpu.memory_space<vmem>>, vector<1x4x384xbf16>
    %1 = vector.shape_cast %0 : vector<1x4x384xbf16> to vector<4x384xbf16>
    %c0_2 = arith.constant 0 : index
    %c0_3 = arith.constant 0 : index
    %c0_4 = arith.constant 0 : index
    %2 = vector.load %arg3[%c0_2, %c0_3, %c0_4] : memref<1x4x128xbf16, #tpu.memory_space<vmem>>, vector<1x4x128xbf16>
    %3 = vector.shape_cast %2 : vector<1x4x128xbf16> to vector<4x128xbf16>
    %4 = tpu.concatenate %1, %3 in 1 : vector<4x384xbf16>, vector<4x128xbf16> -> vector<4x512xbf16>
    %c0_5 = arith.constant 0 : index
    %c0_6 = arith.constant 0 : index
    %c0_7 = arith.constant 0 : index
    %5 = vector.load %arg4[%c0_5, %c0_6, %c0_7] : memref<9x8x4xbf16, #tpu.memory_space<vmem>>, vector<1x8x4xbf16>
    %6 = vector.shape_cast %5 : vector<1x8x4xbf16> to vector<8x4xbf16>
    %7 = vector.extract_strided_slice %4 {offsets = [0, 0], sizes = [4, 384], strides = [1, 1]} : vector<4x512xbf16> to vector<4x384xbf16>
    %cst = arith.constant dense<0.000000e+00> : vector<8x384xf32>
    %8 = tpu.matmul %6, %7, %cst {dimension_numbers = #tpu.dot_dimension_numbers<[1], [0], [0], [1], [0, 0, 1, 1], [], []>} : vector<8x4xbf16>, vector<4x384xbf16>, vector<8x384xf32> -> vector<8x384xf32>
    %c1 = arith.constant 1 : index
    %c0_8 = arith.constant 0 : index
    %c0_9 = arith.constant 0 : index
    %9 = vector.load %arg4[%c1, %c0_8, %c0_9] : memref<9x8x4xbf16, #tpu.memory_space<vmem>>, vector<1x8x4xbf16>
    %10 = vector.shape_cast %9 : vector<1x8x4xbf16> to vector<8x4xbf16>
    %11 = vector.extract_strided_slice %4 {offsets = [0, 1], sizes = [4, 384], strides = [1, 1]} : vector<4x512xbf16> to vector<4x384xbf16>
    %cst_10 = arith.constant dense<0.000000e+00> : vector<8x384xf32>
    %12 = tpu.matmul %10, %11, %cst_10 {dimension_numbers = #tpu.dot_dimension_numbers<[1], [0], [0], [1], [0, 0, 1, 1], [], []>} : vector<8x4xbf16>, vector<4x384xbf16>, vector<8x384xf32> -> vector<8x384xf32>
    %13 = arith.addf %8, %12 : vector<8x384xf32>
    %c2 = arith.constant 2 : index
    %c0_11 = arith.constant 0 : index
    %c0_12 = arith.constant 0 : index
    %14 = vector.load %arg4[%c2, %c0_11, %c0_12] : memref<9x8x4xbf16, #tpu.memory_space<vmem>>, vector<1x8x4xbf16>
    %15 = vector.shape_cast %14 : vector<1x8x4xbf16> to vector<8x4xbf16>
    %16 = vector.extract_strided_slice %4 {offsets = [0, 2], sizes = [4, 384], strides = [1, 1]} : vector<4x512xbf16> to vector<4x384xbf16>
    %cst_13 = arith.constant dense<0.000000e+00> : vector<8x384xf32>
    %17 = tpu.matmul %15, %16, %cst_13 {dimension_numbers = #tpu.dot_dimension_numbers<[1], [0], [0], [1], [0, 0, 1, 1], [], []>} : vector<8x4xbf16>, vector<4x384xbf16>, vector<8x384xf32> -> vector<8x384xf32>
    %18 = arith.addf %13, %17 : vector<8x384xf32>
    %c3 = arith.constant 3 : index
    %c0_14 = arith.constant 0 : index
    %c0_15 = arith.constant 0 : index
    %19 = vector.load %arg4[%c3, %c0_14, %c0_15] : memref<9x8x4xbf16, #tpu.memory_space<vmem>>, vector<1x8x4xbf16>
    %20 = vector.shape_cast %19 : vector<1x8x4xbf16> to vector<8x4xbf16>
    %21 = vector.extract_strided_slice %4 {offsets = [0, 18], sizes = [4, 384], strides = [1, 1]} : vector<4x512xbf16> to vector<4x384xbf16>
    %cst_16 = arith.constant dense<0.000000e+00> : vector<8x384xf32>
    %22 = tpu.matmul %20, %21, %cst_16 {dimension_numbers = #tpu.dot_dimension_numbers<[1], [0], [0], [1], [0, 0, 1, 1], [], []>} : vector<8x4xbf16>, vector<4x384xbf16>, vector<8x384xf32> -> vector<8x384xf32>
    %23 = arith.addf %18, %22 : vector<8x384xf32>
    %c4 = arith.constant 4 : index
    %c0_17 = arith.constant 0 : index
    %c0_18 = arith.constant 0 : index
    %24 = vector.load %arg4[%c4, %c0_17, %c0_18] : memref<9x8x4xbf16, #tpu.memory_space<vmem>>, vector<1x8x4xbf16>
    %25 = vector.shape_cast %24 : vector<1x8x4xbf16> to vector<8x4xbf16>
    %26 = vector.extract_strided_slice %4 {offsets = [0, 19], sizes = [4, 384], strides = [1, 1]} : vector<4x512xbf16> to vector<4x384xbf16>
    %cst_19 = arith.constant dense<0.000000e+00> : vector<8x384xf32>
    %27 = tpu.matmul %25, %26, %cst_19 {dimension_numbers = #tpu.dot_dimension_numbers<[1], [0], [0], [1], [0, 0, 1, 1], [], []>} : vector<8x4xbf16>, vector<4x384xbf16>, vector<8x384xf32> -> vector<8x384xf32>
    %28 = arith.addf %23, %27 : vector<8x384xf32>
    %c5 = arith.constant 5 : index
    %c0_20 = arith.constant 0 : index
    %c0_21 = arith.constant 0 : index
    %29 = vector.load %arg4[%c5, %c0_20, %c0_21] : memref<9x8x4xbf16, #tpu.memory_space<vmem>>, vector<1x8x4xbf16>
    %30 = vector.shape_cast %29 : vector<1x8x4xbf16> to vector<8x4xbf16>
    %31 = vector.extract_strided_slice %4 {offsets = [0, 20], sizes = [4, 384], strides = [1, 1]} : vector<4x512xbf16> to vector<4x384xbf16>
    %cst_22 = arith.constant dense<0.000000e+00> : vector<8x384xf32>
    %32 = tpu.matmul %30, %31, %cst_22 {dimension_numbers = #tpu.dot_dimension_numbers<[1], [0], [0], [1], [0, 0, 1, 1], [], []>} : vector<8x4xbf16>, vector<4x384xbf16>, vector<8x384xf32> -> vector<8x384xf32>
    %33 = arith.addf %28, %32 : vector<8x384xf32>
    %c6 = arith.constant 6 : index
    %c0_23 = arith.constant 0 : index
    %c0_24 = arith.constant 0 : index
    %34 = vector.load %arg4[%c6, %c0_23, %c0_24] : memref<9x8x4xbf16, #tpu.memory_space<vmem>>, vector<1x8x4xbf16>
    %35 = vector.shape_cast %34 : vector<1x8x4xbf16> to vector<8x4xbf16>
    %36 = vector.extract_strided_slice %4 {offsets = [0, 36], sizes = [4, 384], strides = [1, 1]} : vector<4x512xbf16> to vector<4x384xbf16>
    %cst_25 = arith.constant dense<0.000000e+00> : vector<8x384xf32>
    %37 = tpu.matmul %35, %36, %cst_25 {dimension_numbers = #tpu.dot_dimension_numbers<[1], [0], [0], [1], [0, 0, 1, 1], [], []>} : vector<8x4xbf16>, vector<4x384xbf16>, vector<8x384xf32> -> vector<8x384xf32>
    %38 = arith.addf %33, %37 : vector<8x384xf32>
    %c7 = arith.constant 7 : index
    %c0_26 = arith.constant 0 : index
    %c0_27 = arith.constant 0 : index
    %39 = vector.load %arg4[%c7, %c0_26, %c0_27] : memref<9x8x4xbf16, #tpu.memory_space<vmem>>, vector<1x8x4xbf16>
    %40 = vector.shape_cast %39 : vector<1x8x4xbf16> to vector<8x4xbf16>
    %41 = vector.extract_strided_slice %4 {offsets = [0, 37], sizes = [4, 384], strides = [1, 1]} : vector<4x512xbf16> to vector<4x384xbf16>
    %cst_28 = arith.constant dense<0.000000e+00> : vector<8x384xf32>
    %42 = tpu.matmul %40, %41, %cst_28 {dimension_numbers = #tpu.dot_dimension_numbers<[1], [0], [0], [1], [0, 0, 1, 1], [], []>} : vector<8x4xbf16>, vector<4x384xbf16>, vector<8x384xf32> -> vector<8x384xf32>
    %43 = arith.addf %38, %42 : vector<8x384xf32>
    %c8 = arith.constant 8 : index
    %c0_29 = arith.constant 0 : index
    %c0_30 = arith.constant 0 : index
    %44 = vector.load %arg4[%c8, %c0_29, %c0_30] : memref<9x8x4xbf16, #tpu.memory_space<vmem>>, vector<1x8x4xbf16>
    %45 = vector.shape_cast %44 : vector<1x8x4xbf16> to vector<8x4xbf16>
    %46 = vector.extract_strided_slice %4 {offsets = [0, 38], sizes = [4, 384], strides = [1, 1]} : vector<4x512xbf16> to vector<4x384xbf16>
    %cst_31 = arith.constant dense<0.000000e+00> : vector<8x384xf32>
    %47 = tpu.matmul %45, %46, %cst_31 {dimension_numbers = #tpu.dot_dimension_numbers<[1], [0], [0], [1], [0, 0, 1, 1], [], []>} : vector<8x4xbf16>, vector<4x384xbf16>, vector<8x384xf32> -> vector<8x384xf32>
    %48 = arith.addf %43, %47 : vector<8x384xf32>
    %c0_32 = arith.constant 0 : index
    %c0_33 = arith.constant 0 : index
    %49 = vector.load %arg5[%c0_32, %c0_33] : memref<1x384xbf16, #tpu.memory_space<vmem>>, vector<1x384xbf16>
    %50 = arith.extf %49 : vector<1x384xbf16> to vector<1x384xf32>
    %51 = vector.broadcast %50 : vector<1x384xf32> to vector<8x384xf32>
    %52 = arith.mulf %48, %51 : vector<8x384xf32>
    %53 = arith.truncf %52 : vector<8x384xf32> to vector<8x384xbf16>
    %c0_34 = arith.constant 0 : index
    %c0_35 = arith.constant 0 : index
    %c0_36 = arith.constant 0 : index
    %54 = vector.load %arg6[%c0_34, %c0_35, %c0_36] : memref<1x8x384xbf16, #tpu.memory_space<vmem>>, vector<1x8x384xbf16>
    %55 = vector.shape_cast %54 : vector<1x8x384xbf16> to vector<8x384xbf16>
    %56 = vector.shape_cast %53 : vector<8x384xbf16> to vector<1x8x384xbf16>
    tpu.vector_store %arg6[%c0_34, %c0_35, %c0_36], %56 {strides = array<i32>} : memref<1x8x384xbf16, #tpu.memory_space<vmem>>, vector<1x8x384xbf16>,
    %cst_37 = arith.constant dense<0.000000e+00> : vector<8xf32>
    %57 = vector.multi_reduction <add>, %52, %cst_37 [1] : vector<8x384xf32> to vector<8xf32>
    %58 = vector.shape_cast %57 : vector<8xf32> to vector<8x1xf32>
    %59 = arith.mulf %52, %52 : vector<8x384xf32>
    %cst_38 = arith.constant dense<0.000000e+00> : vector<8xf32>
    %60 = vector.multi_reduction <add>, %59, %cst_38 [1] : vector<8x384xf32> to vector<8xf32>
    %61 = vector.shape_cast %60 : vector<8xf32> to vector<8x1xf32>
    %62 = tpu.concatenate %58, %61 in 1 : vector<8x1xf32>, vector<8x1xf32> -> vector<8x2xf32>
    %c0_39 = arith.constant 0 : index
    %c0_40 = arith.constant 0 : index
    %c0_41 = arith.constant 0 : index
    %c0_42 = arith.constant 0 : index
    %63 = vector.load %arg7[%c0_39, %c0_40, %c0_41, %c0_42] : memref<1x1x8x2xf32, #tpu.memory_space<vmem>>, vector<1x1x8x2xf32>
    %64 = vector.shape_cast %63 : vector<1x1x8x2xf32> to vector<8x2xf32>
    %65 = vector.shape_cast %62 : vector<8x2xf32> to vector<1x1x8x2xf32>
    tpu.vector_store %arg7[%c0_39, %c0_40, %c0_41, %c0_42], %65 {strides = array<i32>} : memref<1x1x8x2xf32, #tpu.memory_space<vmem>>, vector<1x1x8x2xf32>,
    return
  }
  func.func @transform_0(%arg0: i32, %arg1: i32) -> (i32, i32, i32) {
    %c0_i32 = arith.constant 0 : i32
    %c0_i32_0 = arith.constant 0 : i32
    return %arg0, %c0_i32, %arg1 : i32, i32, i32
  }
  func.func @transform_1(%arg0: i32, %arg1: i32) -> (i32, i32, i32) {
    %c1_i32 = arith.constant 1 : i32
    %0 = arith.addi %arg1, %c1_i32 : i32
    %c3_i32 = arith.constant 3 : i32
    %1 = arith.muli %0, %c3_i32 : i32
    %c0_i32 = arith.constant 0 : i32
    %c0_i32_0 = arith.constant 0 : i32
    return %arg0, %c0_i32, %1 : i32, i32, i32
  }
  func.func @transform_2(%arg0: i32, %arg1: i32) -> (i32, i32, i32) {
    %c0_i32 = arith.constant 0 : i32
    %c0_i32_0 = arith.constant 0 : i32
    %c0_i32_1 = arith.constant 0 : i32
    %c0_i32_2 = arith.constant 0 : i32
    return %c0_i32, %c0_i32_0, %c0_i32_1 : i32, i32, i32
  }
  func.func @transform_3(%arg0: i32, %arg1: i32) -> (i32, i32) {
    %c0_i32 = arith.constant 0 : i32
    %c0_i32_0 = arith.constant 0 : i32
    return %c0_i32, %arg1 : i32, i32
  }
  func.func @transform_4(%arg0: i32, %arg1: i32) -> (i32, i32, i32) {
    %c0_i32 = arith.constant 0 : i32
    %c0_i32_0 = arith.constant 0 : i32
    return %arg0, %c0_i32, %arg1 : i32, i32, i32
  }
  func.func @transform_5(%arg0: i32, %arg1: i32) -> (i32, i32, i32, i32) {
    %c0_i32 = arith.constant 0 : i32
    %c0_i32_0 = arith.constant 0 : i32
    %c0_i32_1 = arith.constant 0 : i32
    return %arg0, %arg1, %c0_i32, %c0_i32_0 : i32, i32, i32, i32
  }
}

module attributes {stable_mosaic.version = 11 : i64} {
  func.func @_bn_relu_kernel(%arg0: i32, %arg1: i32, %arg2: memref<1x8x384xbf16, #tpu.memory_space<vmem>>, %arg3: memref<8x1xf32, #tpu.memory_space<vmem>>, %arg4: memref<8x1xf32, #tpu.memory_space<vmem>>, %arg5: memref<1x8x384xbf16, #tpu.memory_space<vmem>>) attributes {dimension_semantics = [#tpu.dimension_semantics<parallel>, #tpu.dimension_semantics<parallel>], iteration_bounds = array<i64: 2, 1>, scalar_prefetch = 0 : i64, scratch_operands = 0 : i64, tpu.core_type = #tpu.core_type<tc>, window_params = [{transform_indices = @transform_0, window_bounds = array<i64: 1, 8, 384>}, {pipeline_mode = #tpu.pipeline_mode<synchronous>, transform_indices = @transform_1, window_bounds = array<i64: 8, 1>}, {pipeline_mode = #tpu.pipeline_mode<synchronous>, transform_indices = @transform_2, window_bounds = array<i64: 8, 1>}, {transform_indices = @transform_3, window_bounds = array<i64: 1, 8, 384>}]} {
    %c0 = arith.constant 0 : index
    %c0_0 = arith.constant 0 : index
    %c0_1 = arith.constant 0 : index
    %0 = vector.load %arg2[%c0, %c0_0, %c0_1] : memref<1x8x384xbf16, #tpu.memory_space<vmem>>, vector<1x8x384xbf16>
    %1 = vector.shape_cast %0 : vector<1x8x384xbf16> to vector<8x384xbf16>
    %2 = arith.extf %1 : vector<8x384xbf16> to vector<8x384xf32>
    %c0_2 = arith.constant 0 : index
    %c0_3 = arith.constant 0 : index
    %3 = vector.load %arg3[%c0_2, %c0_3] : memref<8x1xf32, #tpu.memory_space<vmem>>, vector<8x1xf32>
    %4 = vector.broadcast %3 : vector<8x1xf32> to vector<8x384xf32>
    %5 = arith.mulf %2, %4 : vector<8x384xf32>
    %c0_4 = arith.constant 0 : index
    %c0_5 = arith.constant 0 : index
    %6 = vector.load %arg4[%c0_4, %c0_5] : memref<8x1xf32, #tpu.memory_space<vmem>>, vector<8x1xf32>
    %7 = vector.broadcast %6 : vector<8x1xf32> to vector<8x384xf32>
    %8 = arith.addf %5, %7 : vector<8x384xf32>
    %cst = arith.constant 0.000000e+00 : f32
    %9 = vector.broadcast %cst : f32 to vector<8x384xf32>
    %10 = arith.maximumf %8, %9 : vector<8x384xf32>
    %11 = arith.truncf %10 : vector<8x384xf32> to vector<8x384xbf16>
    %c0_6 = arith.constant 0 : index
    %c0_7 = arith.constant 0 : index
    %c0_8 = arith.constant 0 : index
    %12 = vector.load %arg5[%c0_6, %c0_7, %c0_8] : memref<1x8x384xbf16, #tpu.memory_space<vmem>>, vector<1x8x384xbf16>
    %13 = vector.shape_cast %12 : vector<1x8x384xbf16> to vector<8x384xbf16>
    %14 = vector.shape_cast %11 : vector<8x384xbf16> to vector<1x8x384xbf16>
    tpu.vector_store %arg5[%c0_6, %c0_7, %c0_8], %14 {strides = array<i32>} : memref<1x8x384xbf16, #tpu.memory_space<vmem>>, vector<1x8x384xbf16>,
    return
  }
  func.func @transform_0(%arg0: i32, %arg1: i32) -> (i32, i32, i32) {
    %c0_i32 = arith.constant 0 : i32
    %c0_i32_0 = arith.constant 0 : i32
    return %arg0, %c0_i32, %arg1 : i32, i32, i32
  }
  func.func @transform_1(%arg0: i32, %arg1: i32) -> (i32, i32) {
    %c0_i32 = arith.constant 0 : i32
    %c0_i32_0 = arith.constant 0 : i32
    %c0_i32_1 = arith.constant 0 : i32
    return %c0_i32, %c0_i32_0 : i32, i32
  }
  func.func @transform_2(%arg0: i32, %arg1: i32) -> (i32, i32) {
    %c0_i32 = arith.constant 0 : i32
    %c0_i32_0 = arith.constant 0 : i32
    %c0_i32_1 = arith.constant 0 : i32
    return %c0_i32, %c0_i32_0 : i32, i32
  }
  func.func @transform_3(%arg0: i32, %arg1: i32) -> (i32, i32, i32) {
    %c0_i32 = arith.constant 0 : i32
    %c0_i32_0 = arith.constant 0 : i32
    return %arg0, %c0_i32, %arg1 : i32, i32, i32
  }
}

</mosaic_0001>

<bundles_post_ra>
// kernel: basic_conv_forward.3
= control target key start
LH: loop header
LB: loop body
LE: loop exit
PB: predicated region body
PF: predicated region fallthrough
CT: control target
= control target key end

     0   :  { %s423_s12 = smov 0   ;;  %s425_s13 = smov 0   ;;  %s462_s0 = inlined_call_operand.vmem [shape: bf16[2,8,384], index: 0, kind: input, shape index: {}, may-alias: {0,3}]   ;;  %s463_s1 = inlined_call_operand.vmem [shape: f32[8,1], index: 1, kind: input, shape index: {}]   ;;  %s464_s2 = inlined_call_operand.vmem [shape: f32[8,1], index: 2, kind: input, shape index: {}]   ;;  %s465_s3 = inlined_call_operand.vmem [shape: bf16[2,8,384], index: 3, kind: output, shape index: {}, may-alias: {0,3}]  }
   0x1   :  { %s427_s14 = smov 0  }
   0x2 LB: > { %s25_s15 = sadd.s32 1, %s396_s13  ;;  %p342_p0 = scmp.ge.s32.totalorder %s400_s14, 1  ;;  %s400_s14 = sphi %s427_s14, %s13_s14   ;;  %s396_s13 = sphi %s425_s13, %s467_s13   ;;  %s392_s12 = sphi %s423_s12, %s466_s12  }
   0x3   : > { %p27_p1 = scmp.ge.s32.totalorder %s25_s15, 2  ;;  %p158_p2 = scmp.lt.s32.totalorder %s400_s14, 3 }
   0x5   : > { %s469_s15 = smov (%p27_p1, %s25_s15), 0  ;;  %p159_p3 = pnand %p342_p0, %p158_p2 }
   0x6   : > { %p191_p4 = scmp.lt.s32.totalorder (!%p159_p3), %s392_s12, 1 }
   0x7   : > { %162 = sbr.rel (%p159_p3) target bundleno = 149 (0x95), region = 32 }
   0xc   : > { %v215_v0 = vld [vmem:[%s463_s1] sm:$0xff]  ;;  %v402_v1 = vmov 0   ;;  %s471_s12 = smov (!%p191_p4, %s392_s12), 1 }
   0xd   : > { %377 = vset.pattern.permute.xlu0 %v402_v1  ;;  %v224_v2 = vld [vmem:[%s464_s2] sm:$0xff]  ;;  %s351_s20 = smul.u32 12, %s471_s12 }
   0xe   : > { %218 = vperm.xlu0 %377, %v215_v0  }
   0xf   : > { %s198_s23 = scalar_lea.vmem %s462_s0, %s351_s20  ;;  %s208_s26 = scalar_lea.vmem %s465_s3, %s351_s20 }
  0x10   : > { %v210_v3 = vld [vmem:[%s198_s23] sm:$0xff]  ;;  %v211_v4 = vld [vmem:[%s198_s23 + $0x8] sm:$0xf] }
  0x11   : > { %v212_v5 = vunpack.c.l.bf16 %v210_v3  ;;  %v213_v6 = vunpack.c.h.bf16 %v210_v3  ;;  %v214_v7 = vunpack.c.l.bf16 %v211_v4 }
  0x12   : > { %227 = vperm.xlu0 %377, %v224_v2  }
  0x89   : > { %v219_v8 = vpop.permute.xlu0 %218 }
  0x8a   : > { %v221_v9 = vmul.f32 %v219_v8, %v212_v5  ;;  %v222_v10 = vmul.f32 %v219_v8, %v213_v6  ;;  %v223_v11 = vmul.f32 %v219_v8, %v214_v7 }
  0x8d   : > { %v228_v12 = vpop.permute.xlu0 %227 }
  0x8e   : > { %v230_v13 = vadd.f32 %v228_v12, %v221_v9  ;;  %v231_v14 = vadd.f32 %v228_v12, %v222_v10  ;;  %v232_v15 = vadd.f32 %v228_v12, %v223_v11 }
  0x90   : > { %v233_v16 = vmax.f32 %v230_v13, 0.0  ;;  %v234_v17 = vmax.f32 %v231_v14, 0.0  ;;  %v235_v18 = vmax.f32 %v232_v15, 0.0 }
  0x92   : > { %v349_v19 = vpack.c.bf16 %v234_v17, %v233_v16  ;;  %v350_v20 = vpack.c.bf16 %v235_v18, %v235_v18 }
  0x94   : > { %249 = vst [vmem:[%s208_s26] sm:$0xff] %v349_v19  ;;  %250 = vst [vmem:[%s208_s26 + $0x8] sm:$0xf] %v350_v20 }
  0x95 PF: > { %s13_s14 = sadd.s32 1, %s400_s14   ;;  %s466_s12 = smov %s396_s13 }
  0x96   : > { %p10_p5 = scmp.ge.s32.totalorder %s13_s14, 4   ;;  %s467_s13 = smov %s469_s15 }
  0x98   :  { %12 = sbr.rel (!%p10_p5) target bundleno = 2 (0x2), region = 62 }

// kernel: basic_conv_forward.2
= control target key start
LH: loop header
LB: loop body
LE: loop exit
PB: predicated region body
PF: predicated region fallthrough
CT: control target
= control target key end

     0   :  { %s1815_s18 = smov 0   ;;  %s1817_s19 = smov 0   ;;  %s2004_s0 = inlined_call_operand.vmem [shape: bf16[2,4,512], index: 0, kind: input, shape index: {}, may-alias: {0,1}]   ;;  %s2005_s1 = inlined_call_operand.vmem [shape: bf16[2,4,512], index: 1, kind: input, shape index: {}, may-alias: {0,1}]   ;;  %s2006_s2 = inlined_call_operand.vmem [shape: bf16[9,8,4], index: 2, kind: input, shape index: {}]   ;;  %s2007_s3 = inlined_call_operand.vmem [shape: bf16[1,384], index: 3, kind: input, shape index: {}]   ;;  %s2008_s4 = inlined_call_operand.vmem [shape: bf16[2,8,384], index: 4, kind: output, shape index: {0}]   ;;  %s2009_s5 = inlined_call_operand.vmem [shape: f32[2,1,8,2], index: 5, kind: output, shape index: {1}]  }
   0x1   :  { %s1819_s20 = smov 0  }
   0x2 LB: > { %s28_s21 = sadd.s32 1, %s1767_s19  ;;  %p1587_p0 = scmp.ge.s32.totalorder %s1771_s20, 1  ;;  %s1771_s20 = sphi %s1819_s20, %s16_s20   ;;  %s1767_s19 = sphi %s1817_s19, %s2011_s19   ;;  %s1763_s18 = sphi %s1815_s18, %s2010_s18  }
   0x3   : > { %p30_p1 = scmp.ge.s32.totalorder %s28_s21, 2  ;;  %p254_p2 = scmp.lt.s32.totalorder %s1771_s20, 3 }
   0x5   : > { %s2013_s21 = smov (%p30_p1, %s28_s21), 0  ;;  %p255_p3 = pnand %p1587_p0, %p254_p2 }
   0x6   : > { %p320_p4 = scmp.lt.s32.totalorder (!%p255_p3), %s1763_s18, 1  ;;  %s1777_s27 = smov (!%p255_p3), 127  }
   0x7   : > { %258 = sbr.rel (%p255_p3) target bundleno = 554 (0x22a), region = 36  ;;  %s1778_s6 = smov (!%p255_p3), 126  }
   0x8   : > { %s1779_s7 = smov (!%p255_p3), 110   ;;  %s1780_s8 = smov (!%p255_p3), 109  }
   0x9   : > { %s1781_s9 = smov (!%p255_p3), 108   ;;  %s1782_s10 = smov (!%p255_p3), 92  }
   0xa   : > { %s1783_s11 = smov (!%p255_p3), 91   ;;  %s1784_s12 = smov (!%p255_p3), 90  }
   0xc   : > { %v375_v0 = vlaneseq  ;;  %v1773_v1 = vmov 1983009808   ;;  %s2015_s18 = smov (!%p320_p4, %s1763_s18), 1  ;;  %v1774_v5 = vmov 0.0   ;;  %v1775_v6 = vmov 0  }
   0xd   : > { %v373_v2 = vunpack.c.l.s4 %v1773_v1  ;;  %1657 = vmatprep.subr.bf16.mxu1 %v1774_v5  ;;  %449 = vmatprep.mubr.bf16.mxu0 %v1775_v6  ;;  %s1840_s22 = sshll.u32 %s2015_s18, 3  ;;  %vm1776_vm0 = vmmov 0   ;;  %vm399_vm1 = vcmask 1039360   ;;  %vm407_vm2 = vcmask 1041408   ;;  %v1594_v22 = vld [vmem:[%s2006_s2 + $0x4] sm:$0xf] }
   0xe   : > { %v1835_v3 = vshrl.u32 %v375_v0, 7  ;;  %s327_s25 = scalar_lea.vmem %s2004_s0, %s1840_s22  ;;  %s1635_s26 = sadd.s32 6, %s1840_s22  ;;  %1659 = vmatprep.mubr.msk.bf16.mxu1 %vm1776_vm0, %v1774_v5  ;;  %vm403_vm3 = vcmask 31744   ;;  %vm601_vm4 = vcmask 1031168   ;;  %v387_v33 = vld [vmem:[%s2006_s2] sm:$0xf] }
   0xf   : > { %v374_v4 = vunpack.c.0.s8 %v373_v2  ;;  %v368_v8 = vld [vmem:[%s327_s25] sm:$0x3f]  ;;  %s342_s30 = scalar_lea.vmem %s2005_s1, %s1635_s26  ;;  %vm711_vm5 = vcmask 900096   ;;  %v1601_v43 = vld [vmem:[%s2006_s2 + $0x8] sm:$0xf]  ;;  %vm821_vm6 = vcmask 891904   ;;  %s366_s23 = scalar_lea.vmem %s2009_s5, %s1840_s22 }
  0x10   : > { %v371_v10 = vcombine.high %v368_v8, %v368_v8  ;;  %v369_v13 = vld [vmem:[%s342_s30] sm:$0x3]  ;;  %v1605_v53 = vld [vmem:[%s2006_s2 + $0xc] sm:$0xf]  ;;  %vm931_vm7 = vcmask 883712   ;;  %vm1041_vm8 = vcmask 752640  }
  0x11   : > { %v377_v7 = vsub.s32 %v374_v4, %v1835_v3  ;;  %v1609_v63 = vld [vmem:[%s2006_s2 + $0x10] sm:$0xf]  ;;  %vm1151_vm9 = vcmask 744448   ;;  %vm1261_vm10 = vcmask 736256   ;;  %s1711_s13 = smul.u32 12, %s2015_s18  ;;  %vm1420_vm11 = vcmask 7168  }
  0x12   : > { %vm1422_vm12 = vcmask 15360  }
  0x13   : > { %v1850_v9 = vrot.slane %v368_v8, %v377_v7  ;;  %v1853_v11 = vrot.slane %v371_v10, %v377_v7  ;;  %s358_s16 = scalar_lea.vmem %s2008_s4, %s1711_s13 }
  0x15   : > { %391 = vrot.lane.b32.xlu0 %v1850_v9, %s1777_s27  ;;  %v386_v12 = vcombine.high %v1850_v9, %v1850_v9  ;;  %395 = vrot.lane.b32.xlu1 %v1853_v11, %s1777_s27  ;;  %v502_v25 = vsel %vm407_vm2, %v1850_v9, 0  ;;  %v508_v27 = vsel %vm407_vm2, %v1853_v11, 0 }
  0x19   : > { %393 = vrot.lane.b32.xlu0 %v386_v12, %s1777_s27  ;;  %397 = vrot.lane.b32.xlu1 %v369_v13, %s1777_s27 }
  0x1d   : > { %593 = vrot.lane.b32.xlu0 %v1850_v9, %s1778_s6  ;;  %595 = vrot.lane.b32.xlu1 %v386_v12, %s1778_s6 }
  0x21   : > { %597 = vrot.lane.b32.xlu0 %v1853_v11, %s1778_s6  ;;  %599 = vrot.lane.b32.xlu1 %v369_v13, %s1778_s6 }
  0x25   : > { %703 = vrot.lane.b32.xlu0 %v1850_v9, %s1779_s7  ;;  %705 = vrot.lane.b32.xlu1 %v386_v12, %s1779_s7 }
  0x29   : > { %707 = vrot.lane.b32.xlu0 %v1853_v11, %s1779_s7  ;;  %709 = vrot.lane.b32.xlu1 %v369_v13, %s1779_s7 }
  0x2d   : > { %813 = vrot.lane.b32.xlu0 %v1850_v9, %s1780_s8  ;;  %815 = vrot.lane.b32.xlu1 %v386_v12, %s1780_s8 }
  0x31   : > { %817 = vrot.lane.b32.xlu0 %v1853_v11, %s1780_s8  ;;  %819 = vrot.lane.b32.xlu1 %v369_v13, %s1780_s8 }
  0x35   : > { %923 = vrot.lane.b32.xlu0 %v1850_v9, %s1781_s9  ;;  %925 = vrot.lane.b32.xlu1 %v386_v12, %s1781_s9 }
  0x39   : > { %927 = vrot.lane.b32.xlu0 %v1853_v11, %s1781_s9  ;;  %929 = vrot.lane.b32.xlu1 %v369_v13, %s1781_s9 }
  0x3d   : > { %1033 = vrot.lane.b32.xlu0 %v1850_v9, %s1782_s10  ;;  %1035 = vrot.lane.b32.xlu1 %v386_v12, %s1782_s10 }
  0x41   : > { %1037 = vrot.lane.b32.xlu0 %v1853_v11, %s1782_s10  ;;  %1039 = vrot.lane.b32.xlu1 %v369_v13, %s1782_s10 }
  0x45   : > { %1143 = vrot.lane.b32.xlu0 %v1850_v9, %s1783_s11  ;;  %1145 = vrot.lane.b32.xlu1 %v386_v12, %s1783_s11 }
  0x49   : > { %1147 = vrot.lane.b32.xlu0 %v1853_v11, %s1783_s11  ;;  %1149 = vrot.lane.b32.xlu1 %v369_v13, %s1783_s11 }
  0x4d   : > { %1253 = vrot.lane.b32.xlu0 %v1850_v9, %s1784_s12  ;;  %1255 = vrot.lane.b32.xlu1 %v386_v12, %s1784_s12 }
  0x51   : > { %1257 = vrot.lane.b32.xlu0 %v1853_v11, %s1784_s12  ;;  %1259 = vrot.lane.b32.xlu1 %v369_v13, %s1784_s12 }
  0x87   : > { %v392_v14 = vpop.permute.xlu0 %391  ;;  %v396_v15 = vpop.permute.xlu1 %395 }
  0x8b   : > { %v394_v16 = vpop.permute.xlu0 %393  ;;  %v398_v19 = vpop.permute.xlu1 %397 }
  0x8c   : > { %v401_v17 = vsel %vm399_vm1, %v394_v16, %v396_v15  ;;  %v400_v18 = vsel %vm399_vm1, %v392_v14, %v394_v16  ;;  %v402_v21 = vsel %vm399_vm1, %v396_v15, %v398_v19 }
  0x8d   : > { %1595 = vmatprep.subr.msk.bf16.mxu0 %vm407_vm2, %v401_v17  ;;  %v409_v20 = vsel %vm407_vm2, %v400_v18, 0  ;;  %v415_v23 = vsel %vm407_vm2, %v402_v21, 0 }
  0x8e   : > { %432 = vmatpush1.bf16.msra.mxu0 %v409_v20  ;;  %1658 = vmatpush3.bf16.msra.mxu1 %v415_v23 }
  0x8f   : > { %1598 = vmatprep.subr.msk.bf16.mxu0 %vm407_vm2, %v386_v12  ;;  %v594_v24 = vpop.permute.xlu0 %593  ;;  %v596_v26 = vpop.permute.xlu1 %595  ;;  %1663 = vmatprep.subr.bf16.mxu1 %v1774_v5  ;;  %v1613_v12 = vld [vmem:[%s2006_s2 + $0x14] sm:$0xf] }
  0x90   : > { %v602_v29 = vsel %vm601_vm4, %v594_v24, %v596_v26 }
  0x91   : > { %1596 = vmatmul.mubr.msk.bf16.vlgmr.msra.gmra.mxu0 %vm403_vm3, %v1594_v22  ;;  %1660 = vmatmul.mubr.msk.bf16.vlgmr.msra.gmra.mxu1 %vm403_vm3, %v1594_v22  ;;  %v609_v34 = vsel %vm407_vm2, %v602_v29, 0  ;;  %v1617_v22 = vld [vmem:[%s2006_s2 + $0x18] sm:$0xf] }
  0x92   : > { %525 = vmatpush1.bf16.msra.mxu0 %v502_v25  ;;  %542 = vmatprep.mubr.bf16.mxu0 %v1775_v6 }
  0x93   : > { %v598_v28 = vpop.permute.xlu0 %597  ;;  %1664 = vmatpush3.bf16.msra.mxu1 %v508_v27  ;;  %1665 = vmatprep.mubr.msk.bf16.mxu1 %vm1776_vm0, %v1774_v5  ;;  %v600_v31 = vpop.permute.xlu1 %599 }
  0x94   : > { %v603_v30 = vsel %vm601_vm4, %v596_v26, %v598_v28  ;;  %1669 = vmatprep.subr.bf16.mxu1 %v1774_v5  ;;  %v604_v32 = vsel %vm601_vm4, %v598_v28, %v600_v31 }
  0x95   : > { %1602 = vmatprep.subr.msk.bf16.mxu0 %vm407_vm2, %v603_v30  ;;  %v615_v36 = vsel %vm407_vm2, %v604_v32, 0  ;;  %v1621_v32 = vld [vmem:[%s2006_s2 + $0x1c] sm:$0xf] }
  0x97   : > { %v704_v35 = vpop.permute.xlu0 %703  ;;  %v706_v37 = vpop.permute.xlu1 %705 }
  0x98   : > { %v712_v39 = vsel %vm711_vm5, %v704_v35, %v706_v37  ;;  %v1625_v35 = vld [vmem:[%s2006_s2 + $0x20] sm:$0xf] }
  0x99   : > { %1599 = vmatmul.mubr.msk.bf16.vlgmr.msra.gmra.mxu0 %vm403_vm3, %v387_v33  ;;  %1666 = vmatmul.mubr.msk.bf16.vlgmr.msra.gmra.mxu1 %vm403_vm3, %v387_v33  ;;  %v719_v44 = vsel %vm407_vm2, %v712_v39, 0 }
  0x9a   : > { %632 = vmatpush1.bf16.msra.mxu0 %v609_v34  ;;  %649 = vmatprep.mubr.bf16.mxu0 %v1775_v6 }
  0x9b   : > { %v708_v38 = vpop.permute.xlu0 %707  ;;  %1670 = vmatpush3.bf16.msra.mxu1 %v615_v36  ;;  %1671 = vmatprep.mubr.msk.bf16.mxu1 %vm1776_vm0, %v1774_v5  ;;  %v710_v41 = vpop.permute.xlu1 %709 }
  0x9c   : > { %v713_v40 = vsel %vm711_vm5, %v706_v37, %v708_v38  ;;  %1675 = vmatprep.subr.bf16.mxu1 %v1774_v5  ;;  %v714_v42 = vsel %vm711_vm5, %v708_v38, %v710_v41 }
  0x9d   : > { %1606 = vmatprep.subr.msk.bf16.mxu0 %vm407_vm2, %v713_v40  ;;  %v725_v46 = vsel %vm407_vm2, %v714_v42, 0 }
  0x9f   : > { %v814_v45 = vpop.permute.xlu0 %813  ;;  %v816_v47 = vpop.permute.xlu1 %815 }
  0xa0   : > { %v822_v49 = vsel %vm821_vm6, %v814_v45, %v816_v47 }
  0xa1   : > { %1603 = vmatmul.mubr.msk.bf16.vlgmr.msra.gmra.mxu0 %vm403_vm3, %v1601_v43  ;;  %1672 = vmatmul.mubr.msk.bf16.vlgmr.msra.gmra.mxu1 %vm403_vm3, %v1601_v43  ;;  %v829_v54 = vsel %vm407_vm2, %v822_v49, 0 }
  0xa2   : > { %742 = vmatpush1.bf16.msra.mxu0 %v719_v44  ;;  %759 = vmatprep.mubr.bf16.mxu0 %v1775_v6 }
  0xa3   : > { %v818_v48 = vpop.permute.xlu0 %817  ;;  %1676 = vmatpush3.bf16.msra.mxu1 %v725_v46  ;;  %1677 = vmatprep.mubr.msk.bf16.mxu1 %vm1776_vm0, %v1774_v5  ;;  %v820_v51 = vpop.permute.xlu1 %819 }
  0xa4   : > { %v823_v50 = vsel %vm821_vm6, %v816_v47, %v818_v48  ;;  %1681 = vmatprep.subr.bf16.mxu1 %v1774_v5  ;;  %v824_v52 = vsel %vm821_vm6, %v818_v48, %v820_v51 }
  0xa5   : > { %1610 = vmatprep.subr.msk.bf16.mxu0 %vm407_vm2, %v823_v50  ;;  %v835_v56 = vsel %vm407_vm2, %v824_v52, 0 }
  0xa7   : > { %v924_v55 = vpop.permute.xlu0 %923  ;;  %v926_v57 = vpop.permute.xlu1 %925 }
  0xa8   : > { %v932_v59 = vsel %vm931_vm7, %v924_v55, %v926_v57 }
  0xa9   : > { %1607 = vmatmul.mubr.msk.bf16.vlgmr.msra.gmra.mxu0 %vm403_vm3, %v1605_v53  ;;  %1678 = vmatmul.mubr.msk.bf16.vlgmr.msra.gmra.mxu1 %vm403_vm3, %v1605_v53  ;;  %v939_v0 = vsel %vm407_vm2, %v932_v59, 0 }
  0xaa   : > { %852 = vmatpush1.bf16.msra.mxu0 %v829_v54  ;;  %869 = vmatprep.mubr.bf16.mxu0 %v1775_v6 }
  0xab   : > { %v928_v58 = vpop.permute.xlu0 %927  ;;  %1682 = vmatpush3.bf16.msra.mxu1 %v835_v56  ;;  %1683 = vmatprep.mubr.msk.bf16.mxu1 %vm1776_vm0, %v1774_v5  ;;  %v930_v61 = vpop.permute.xlu1 %929 }
  0xac   : > { %v933_v60 = vsel %vm931_vm7, %v926_v57, %v928_v58  ;;  %1687 = vmatprep.subr.bf16.mxu1 %v1774_v5  ;;  %v934_v62 = vsel %vm931_vm7, %v928_v58, %v930_v61 }
  0xad   : > { %1614 = vmatprep.subr.msk.bf16.mxu0 %vm407_vm2, %v933_v60  ;;  %v945_v2 = vsel %vm407_vm2, %v934_v62, 0 }
  0xaf   : > { %v1034_v1 = vpop.permute.xlu0 %1033  ;;  %v1036_v4 = vpop.permute.xlu1 %1035 }
  0xb0   : > { %v1042_v8 = vsel %vm1041_vm8, %v1034_v1, %v1036_v4 }
  0xb1   : > { %1611 = vmatmul.mubr.msk.bf16.vlgmr.msra.gmra.mxu0 %vm403_vm3, %v1609_v63  ;;  %1684 = vmatmul.mubr.msk.bf16.vlgmr.msra.gmra.mxu1 %vm403_vm3, %v1609_v63  ;;  %v1049_v13 = vsel %vm407_vm2, %v1042_v8, 0 }
  0xb2   : > { %962 = vmatpush1.bf16.msra.mxu0 %v939_v0  ;;  %979 = vmatprep.mubr.bf16.mxu0 %v1775_v6 }
  0xb3   : > { %v1038_v7 = vpop.permute.xlu0 %1037  ;;  %1688 = vmatpush3.bf16.msra.mxu1 %v945_v2  ;;  %1689 = vmatprep.mubr.msk.bf16.mxu1 %vm1776_vm0, %v1774_v5  ;;  %v1040_v10 = vpop.permute.xlu1 %1039 }
  0xb4   : > { %v1043_v9 = vsel %vm1041_vm8, %v1036_v4, %v1038_v7  ;;  %1693 = vmatprep.subr.bf16.mxu1 %v1774_v5  ;;  %v1044_v11 = vsel %vm1041_vm8, %v1038_v7, %v1040_v10 }
  0xb5   : > { %1618 = vmatprep.subr.msk.bf16.mxu0 %vm407_vm2, %v1043_v9  ;;  %v1055_v15 = vsel %vm407_vm2, %v1044_v11, 0 }
  0xb7   : > { %v1144_v14 = vpop.permute.xlu0 %1143  ;;  %v1146_v16 = vpop.permute.xlu1 %1145 }
  0xb8   : > { %v1152_v18 = vsel %vm1151_vm9, %v1144_v14, %v1146_v16 }
  0xb9   : > { %1615 = vmatmul.mubr.msk.bf16.vlgmr.msra.gmra.mxu0 %vm403_vm3, %v1613_v12  ;;  %1690 = vmatmul.mubr.msk.bf16.vlgmr.msra.gmra.mxu1 %vm403_vm3, %v1613_v12  ;;  %v1159_v23 = vsel %vm407_vm2, %v1152_v18, 0 }
  0xba   : > { %1072 = vmatpush1.bf16.msra.mxu0 %v1049_v13  ;;  %1089 = vmatprep.mubr.bf16.mxu0 %v1775_v6 }
  0xbb   : > { %v1148_v17 = vpop.permute.xlu0 %1147  ;;  %1694 = vmatpush3.bf16.msra.mxu1 %v1055_v15  ;;  %1695 = vmatprep.mubr.msk.bf16.mxu1 %vm1776_vm0, %v1774_v5  ;;  %v1150_v20 = vpop.permute.xlu1 %1149 }
  0xbc   : > { %v1153_v19 = vsel %vm1151_vm9, %v1146_v16, %v1148_v17  ;;  %1699 = vmatprep.subr.bf16.mxu1 %v1774_v5  ;;  %v1154_v21 = vsel %vm1151_vm9, %v1148_v17, %v1150_v20 }
  0xbd   : > { %1622 = vmatprep.subr.msk.bf16.mxu0 %vm407_vm2, %v1153_v19  ;;  %v1165_v25 = vsel %vm407_vm2, %v1154_v21, 0 }
  0xbf   : > { %v1254_v24 = vpop.permute.xlu0 %1253  ;;  %v1256_v26 = vpop.permute.xlu1 %1255 }
  0xc0   : > { %v1262_v28 = vsel %vm1261_vm10, %v1254_v24, %v1256_v26 }
  0xc1   : > { %1619 = vmatmul.mubr.msk.bf16.vlgmr.msra.gmra.mxu0 %vm403_vm3, %v1617_v22  ;;  %1696 = vmatmul.mubr.msk.bf16.vlgmr.msra.gmra.mxu1 %vm403_vm3, %v1617_v22  ;;  %v1269_v33 = vsel %vm407_vm2, %v1262_v28, 0 }
  0xc2   : > { %1182 = vmatpush1.bf16.msra.mxu0 %v1159_v23  ;;  %1199 = vmatprep.mubr.bf16.mxu0 %v1775_v6 }
  0xc3   : > { %v1258_v27 = vpop.permute.xlu0 %1257  ;;  %1700 = vmatpush3.bf16.msra.mxu1 %v1165_v25  ;;  %1701 = vmatprep.mubr.msk.bf16.mxu1 %vm1776_vm0, %v1774_v5  ;;  %v1260_v30 = vpop.permute.xlu1 %1259  ;;  %v1361_v25 = vld [vmem:[%s2007_s3] sm:$0x7] }
  0xc4   : > { %v1263_v29 = vsel %vm1261_vm10, %v1256_v26, %v1258_v27  ;;  %1705 = vmatprep.subr.bf16.mxu1 %v1774_v5  ;;  %v1264_v31 = vsel %vm1261_vm10, %v1258_v27, %v1260_v30 }
  0xc5   : > { %1626 = vmatprep.subr.msk.bf16.mxu0 %vm407_vm2, %v1263_v29  ;;  %v1275_v34 = vsel %vm407_vm2, %v1264_v31, 0 }
  0xc9   : > { %1623 = vmatmul.mubr.msk.bf16.vlgmr.msra.gmra.mxu0 %vm403_vm3, %v1621_v32  ;;  %1702 = vmatmul.mubr.msk.bf16.vlgmr.msra.gmra.mxu1 %vm403_vm3, %v1621_v32 }
  0xca   : > { %1292 = vmatpush1.bf16.msra.mxu0 %v1269_v33  ;;  %1309 = vmatprep.mubr.bf16.mxu0 %v1775_v6  ;;  %v1362_v33 = vunpack.c.l.bf16 %v1361_v25 }
  0xcb   : > { %1706 = vmatpush3.bf16.msra.mxu1 %v1275_v34  ;;  %1707 = vmatprep.mubr.msk.bf16.mxu1 %vm1776_vm0, %v1774_v5 }
  0xd1   : > { %1627 = vmatmul.mubr.msk.bf16.vlgmr.msra.gmra.mxu0 %vm403_vm3, %v1625_v35  ;;  %1708 = vmatmul.mubr.msk.bf16.vlgmr.msra.gmra.mxu1 %vm403_vm3, %v1625_v35 }
 0x151   : > { %v451_v36 = vpop.f32.mrf.mxu0  ;;  %v492_v38 = vpop.f32.mrf.mxu1 }
 0x153   : > { %v453_v37 = vpop.f32.mrf.mxu0  ;;  %v1661_v40 = vpop.f32.mrf.mxu1 }
 0x154   : > { %v1366_v40 = vsub.s32 0, %v1835_v3 }
 0x155   : > { %v455_v39 = vpop.f32.mrf.mxu0  ;;  %v495_v41 = vpop.f32.mrf.mxu1 }
 0x157   : > { %v456_v6 = vpop.f32.mrf.mxu0  ;;  %v1662_v42 = vpop.f32.mrf.mxu1 }
 0x159   : > { %v544_v43 = vpop.f32.mrf.mxu0  ;;  %v585_v45 = vpop.f32.mrf.mxu1 }
 0x15a   : > { %v545_v24 = vadd.f32 %v544_v43, %v451_v36  ;;  %v586_v29 = vadd.f32 %v585_v45, %v492_v38  ;;  %v1370_v36 = vsub.s32 2, %v1835_v3 }
 0x15b   : > { %v546_v44 = vpop.f32.mrf.mxu0  ;;  %v1667_v46 = vpop.f32.mrf.mxu1 }
 0x15c   : > { %v547_v28 = vadd.f32 %v546_v44, %v453_v37  ;;  %v1374_v46 = vsub.s32 4, %v1835_v3 }
 0x15d   : > { %v548_v5 = vpop.f32.mrf.mxu0  ;;  %v588_v48 = vpop.f32.mrf.mxu1 }
 0x15e   : > { %v1367_v48 = vrot.slane %v1362_v33, %v1366_v40 }
 0x15f   : > { %v549_v47 = vpop.f32.mrf.mxu0  ;;  %v1668_v49 = vpop.f32.mrf.mxu1 }
 0x160   : > { %v1382_v3 = vrot.slane %v1367_v48, %v1366_v40 }
 0x161   : > { %v651_v50 = vpop.f32.mrf.mxu0  ;;  %v692_v52 = vpop.f32.mrf.mxu1 }
 0x162   : > { %v698_v30 = vadd.f32 %v651_v50, %v545_v24  ;;  %v700_v35 = vadd.f32 %v692_v52, %v586_v29 }
 0x163   : > { %v653_v51 = vpop.f32.mrf.mxu0  ;;  %v1673_v54 = vpop.f32.mrf.mxu1 }
 0x164   : > { %v699_v34 = vadd.f32 %v653_v51, %v547_v28  ;;  %v1371_v51 = vrot.slane %v1362_v33, %v1370_v36 }
 0x165   : > { %v655_v53 = vpop.f32.mrf.mxu0  ;;  %v695_v56 = vpop.f32.mrf.mxu1 }
 0x167   : > { %v656_v55 = vpop.f32.mrf.mxu0  ;;  %v1674_v57 = vpop.f32.mrf.mxu1 }
 0x168   : > { %v1375_v55 = vrot.slane %v1362_v33, %v1374_v46 }
 0x169   : > { %v761_v58 = vpop.f32.mrf.mxu0  ;;  %v802_v60 = vpop.f32.mrf.mxu1 }
 0x16a   : > { %v808_v39 = vadd.f32 %v761_v58, %v698_v30  ;;  %v810_v43 = vadd.f32 %v802_v60, %v700_v35 }
 0x16b   : > { %v763_v59 = vpop.f32.mrf.mxu0  ;;  %v1679_v62 = vpop.f32.mrf.mxu1 }
 0x16c   : > { %v809_v42 = vadd.f32 %v763_v59, %v699_v34 }
 0x16d   : > { %v765_v61 = vpop.f32.mrf.mxu0  ;;  %v805_v0 = vpop.f32.mrf.mxu1 }
 0x16f   : > { %v766_v63 = vpop.f32.mrf.mxu0  ;;  %v1680_v1 = vpop.f32.mrf.mxu1 }
 0x170   : > { %v1386_v63 = vrot.slane %v1371_v51, %v1366_v40 }
 0x171   : > { %v871_v2 = vpop.f32.mrf.mxu0  ;;  %v912_v7 = vpop.f32.mrf.mxu1 }
 0x172   : > { %v918_v5 = vadd.f32 %v871_v2, %v808_v39  ;;  %v920_v45 = vadd.f32 %v912_v7, %v810_v43 }
 0x173   : > { %v873_v4 = vpop.f32.mrf.mxu0  ;;  %v1685_v9 = vpop.f32.mrf.mxu1 }
 0x174   : > { %v919_v44 = vadd.f32 %v873_v4, %v809_v42  ;;  %v1390_v4 = vrot.slane %v1375_v55, %v1366_v40 }
 0x175   : > { %v875_v8 = vpop.f32.mrf.mxu0  ;;  %v915_v11 = vpop.f32.mrf.mxu1 }
 0x177   : > { %v876_v10 = vpop.f32.mrf.mxu0  ;;  %v1686_v12 = vpop.f32.mrf.mxu1 }
 0x179   : > { %v981_v13 = vpop.f32.mrf.mxu0  ;;  %v1022_v15 = vpop.f32.mrf.mxu1 }
 0x17a   : > { %v1028_v47 = vadd.f32 %v981_v13, %v918_v5  ;;  %v1030_v53 = vadd.f32 %v1022_v15, %v920_v45 }
 0x17b   : > { %v983_v14 = vpop.f32.mrf.mxu0  ;;  %v1691_v17 = vpop.f32.mrf.mxu1 }
 0x17c   : > { %v1029_v52 = vadd.f32 %v983_v14, %v919_v44 }
 0x17d   : > { %v985_v16 = vpop.f32.mrf.mxu0  ;;  %v1025_v19 = vpop.f32.mrf.mxu1 }
 0x17f   : > { %v986_v18 = vpop.f32.mrf.mxu0  ;;  %v1692_v20 = vpop.f32.mrf.mxu1 }
 0x181   : > { %v1091_v21 = vpop.f32.mrf.mxu0  ;;  %v1132_v23 = vpop.f32.mrf.mxu1 }
 0x182   : > { %v1138_v54 = vadd.f32 %v1091_v21, %v1028_v47  ;;  %v1140_v59 = vadd.f32 %v1132_v23, %v1030_v53 }
 0x183   : > { %v1093_v22 = vpop.f32.mrf.mxu0  ;;  %v1697_v27 = vpop.f32.mrf.mxu1 }
 0x184   : > { %v1139_v58 = vadd.f32 %v1093_v22, %v1029_v52 }
 0x185   : > { %v1095_v26 = vpop.f32.mrf.mxu0  ;;  %v1135_v32 = vpop.f32.mrf.mxu1 }
 0x187   : > { %v1096_v31 = vpop.f32.mrf.mxu0  ;;  %v1698_v6 = vpop.f32.mrf.mxu1 }
 0x189   : > { %v1201_v41 = vpop.f32.mrf.mxu0  ;;  %v1242_v38 = vpop.f32.mrf.mxu1 }
 0x18a   : > { %v1248_v60 = vadd.f32 %v1201_v41, %v1138_v54  ;;  %v1250_v1 = vadd.f32 %v1242_v38, %v1140_v59 }
 0x18b   : > { %v1203_v37 = vpop.f32.mrf.mxu0  ;;  %v1703_v50 = vpop.f32.mrf.mxu1 }
 0x18c   : > { %v1249_v0 = vadd.f32 %v1203_v37, %v1139_v58 }
 0x18d   : > { %v1205_v49 = vpop.f32.mrf.mxu0  ;;  %v1245_v57 = vpop.f32.mrf.mxu1 }
 0x18f   : > { %v1206_v56 = vpop.f32.mrf.mxu0  ;;  %v1704_v61 = vpop.f32.mrf.mxu1 }
 0x191   : > { %v1311_v62 = vpop.f32.mrf.mxu0  ;;  %v1352_v8 = vpop.f32.mrf.mxu1 }
 0x192   : > { %v1358_v2 = vadd.f32 %v1311_v62, %v1248_v60  ;;  %v1360_v11 = vadd.f32 %v1352_v8, %v1250_v1 }
 0x193   : > { %v1313_v7 = vpop.f32.mrf.mxu0  ;;  %v1709_v13 = vpop.f32.mrf.mxu1 }
 0x194   : > { %v1391_v9 = vmul.f32 %v1382_v3, %v1358_v2  ;;  %v1359_v10 = vadd.f32 %v1313_v7, %v1249_v0  ;;  %v1393_v15 = vmul.f32 %v1390_v4, %v1360_v11 }
 0x195   : > { %v1315_v12 = vpop.f32.mrf.mxu0  ;;  %v1355_v17 = vpop.f32.mrf.mxu1 }
 0x196   : > { %v1392_v14 = vmul.f32 %v1386_v63, %v1359_v10  ;;  %v1413_v18 = vmul.f32 %v1391_v9, %v1391_v9  ;;  %v1637_v20 = vpack.c.bf16 %v1393_v15, %v1393_v15  ;;  %v1415_v25 = vmul.f32 %v1393_v15, %v1393_v15 }
 0x197   : > { %v1316_v16 = vpop.f32.mrf.mxu0  ;;  %v1710_v23 = vpop.f32.mrf.mxu1 }
 0x198   : > { %v1636_v19 = vpack.c.bf16 %v1392_v14, %v1391_v9  ;;  %v1409_v21 = vadd.f32 %v1392_v14, %v1391_v9  ;;  %v1414_v22 = vmul.f32 %v1392_v14, %v1392_v14  ;;  %1408 = vst [vmem:[%s358_s16 + $0x8] sm:$0xf] %v1637_v20 }
 0x19a   : > { %1407 = vst [vmem:[%s358_s16] sm:$0xff] %v1636_v19  ;;  %v1410_v24 = vadd.f32 %v1409_v21, %v1393_v15  ;;  %v1416_v26 = vadd.f32 %v1414_v22, %v1413_v18 }
 0x19c   : > { %1411 = vadd.xlane.f32.xlu0 %v1410_v24  ;;  %v1417_v27 = vadd.f32 %v1416_v26, %v1415_v25 }
 0x19e   : > { %1418 = vadd.xlane.f32.xlu1 %v1417_v27 }
 0x225   : > { %v1412_v28 = vpop.xlane.xlu0 %1411 }
 0x227   : > { %v1419_v29 = vpop.xlane.xlu1 %1418 }
 0x228   : > { %v1421_v30 = vsel %vm1420_vm11, %v1412_v28, %v1419_v29 }
 0x229   : > { %1423 = vst.msk [vmem:[%s366_s23] sm:$0xff] %vm1422_vm12, %v1421_v30 }
 0x22a PF: > { %s16_s20 = sadd.s32 1, %s1771_s20   ;;  %s2010_s18 = smov %s1767_s19 }
 0x22b   : > { %p13_p5 = scmp.ge.s32.totalorder %s16_s20, 4   ;;  %s2011_s19 = smov %s2013_s21 }
 0x22d   :  { %15 = sbr.rel (!%p13_p5) target bundleno = 2 (0x2), region = 92 }

</bundles_post_ra>
